<compile_context>
chip_gen: v7x
topology: tpu7x:2x2x1
jax: 0.10.0
libtpu: 0.0.40
codegen_flags: <defaults>
</compile_context>

<pallas_src>
import math
import functools
import numpy as np
import jax
import jax.numpy as jnp
from jax.experimental import pallas as pl
from jax.experimental.pallas import tpu as pltpu


# ---------------------------------------------------------------------------
# Tiling / padding / VMEM helpers
# ---------------------------------------------------------------------------
def _round_up(x, m):
    return (x + m - 1) // m * m


def _tile_and_pad(dim, target):
    """Lane-style dim: pick a multiple-of-128 tile <= target minimizing padding."""
    dim128 = _round_up(dim, 128)
    if dim128 <= target:
        return dim128, dim128
    best_t, best_pad = 128, _round_up(dim128, 128)
    t = (target // 128) * 128
    while t >= 128:
        pad = _round_up(dim128, t)
        if pad < best_pad or (pad == best_pad and t > best_t):
            best_t, best_pad = t, pad
        t -= 128
    return best_t, best_pad


def _row_tile_and_pad(rows, target):
    """Sublane-style dim: tile is a multiple of 8 (or the whole dim)."""
    t = min(target, _round_up(rows, 8))
    return t, _round_up(rows, t)


def _pad2d(a, rows, cols):
    pr, pc = rows - a.shape[0], cols - a.shape[1]
    if pr or pc:
        a = jnp.pad(a, ((0, pr), (0, pc)))
    return a


@functools.lru_cache(maxsize=1)
def _vmem_capacity_bytes():
    try:
        info = pltpu.get_tpu_info()
        cap = getattr(info, "vmem_capacity_bytes", None)
        if cap:
            return int(cap)
    except Exception:
        pass
    return 64 << 20   # conservative fallback (v7x per-TensorCore VMEM)


def _vmem_limit(tm, tn, tk, a_dtype, b_dtype, out_dtype):
    # 2x per input tile + 2x output tile (double buffering) + f32 accumulator + headroom.
    est = (2 * tm * tk * jnp.dtype(a_dtype).itemsize
           + 2 * tk * tn * jnp.dtype(b_dtype).itemsize
           + 2 * tm * tn * jnp.dtype(out_dtype).itemsize
           + tm * tn * 4
           + (4 << 20))
    cap = _vmem_capacity_bytes()
    return int(max(32 << 20, min(est, int(cap * 0.85))))


def _tile_targets():
    cap = _vmem_capacity_bytes()
    if cap >= (96 << 20):          # v5e / v6e: 128 MiB physical VMEM
        return 1024, 2048, 1024    # tm, tn, tk
    return 512, 1024, 1024         # v7x: 64 MiB per TensorCore


# ---------------------------------------------------------------------------
# Generic tiled matmul kernel:  O = A @ B  with f32 accumulation in VMEM scratch
# ---------------------------------------------------------------------------
def _matmul_kernel(a_ref, b_ref, o_ref, acc_ref):
    @pl.when(pl.program_id(2) == 0)
    def _init():
        acc_ref[...] = jnp.zeros_like(acc_ref)

    acc_ref[...] += jnp.dot(a_ref[...], b_ref[...],
                            preferred_element_type=jnp.float32)

    @pl.when(pl.program_id(2) == pl.num_programs(2) - 1)
    def _finalize():
        o_ref[...] = acc_ref[...].astype(o_ref.dtype)


def tiled_matmul(a, b, *, tm, tn, tk, out_dtype):
    m, k = a.shape
    k2, n = b.shape
    assert k == k2
    assert m % tm == 0 and n % tn == 0 and k % tk == 0, (m, n, k, tm, tn, tk)

    return pl.pallas_call(
        _matmul_kernel,
        out_shape=jax.ShapeDtypeStruct((m, n), out_dtype),
        grid=(m // tm, n // tn, k // tk),
        in_specs=[
            pl.BlockSpec((tm, tk), lambda i, j, kk: (i, kk)),
            pl.BlockSpec((tk, tn), lambda i, j, kk: (kk, j)),
        ],
        out_specs=pl.BlockSpec((tm, tn), lambda i, j, kk: (i, j)),
        scratch_shapes=[pltpu.VMEM((tm, tn), jnp.float32)],
        compiler_params=pltpu.CompilerParams(
            dimension_semantics=("parallel", "parallel", "arbitrary"),
            vmem_limit_bytes=_vmem_limit(tm, tn, tk, a.dtype, b.dtype, out_dtype),
        ),
    )(a, b)


# ---------------------------------------------------------------------------
# Forward pass (glue: sparse -> dense M, fold M into V, pad, pick path)
# ---------------------------------------------------------------------------
def svft_forward(x, u, v, s_pre, s_vals, s_row, s_col, gate,
                 *, materialize_weight=None, compute_dtype=jnp.bfloat16):
    n = s_pre.shape[0]
    d_out = u.shape[0]
    d_in = v.shape[1]
    out_dtype = x.dtype

    # del_s = diag(s_pre) + scatter(s * sigmoid(gate)); duplicates add, matching
    # SparseTensor coalesce/sum semantics.
    # TODO(synk): arbitrary COO scatter-add has no clean Pallas equivalent; the
    # (n,n) M build stays as tiny JAX glue on the wrapper side.
    m = jnp.zeros((n, n), jnp.float32).at[s_row, s_col].add(
        s_vals.astype(jnp.float32) * jax.nn.sigmoid(gate.astype(jnp.float32)))
    m = m + jnp.diag(s_pre.astype(jnp.float32))

    # Fold M into V once (f32 for accuracy): Vtm = (M @ V)^T = V^T M^T  -> (d_in, n).
    vtm = (m @ v.astype(jnp.float32)).T.astype(compute_dtype)      # (d_in, n)
    ut = u.T.astype(compute_dtype)                                 # (n, d_out)

    lead = x.shape[:-1]
    x2d = x.reshape(-1, d_in).astype(compute_dtype)
    rows = x2d.shape[0]

    # Generation-aware tile targets + lane/tile-friendly zero padding
    # (padded rows/cols contract against zeros and are sliced off at the end).
    tm_t, tn_t, tk_t = _tile_targets()
    t_row, rows_p = _row_tile_and_pad(rows, tm_t)
    t_in, d_in_p = _tile_and_pad(d_in, tk_t)
    t_out, d_out_p = _tile_and_pad(d_out, tn_t)
    n_p = _round_up(n, 128)

    x_p = _pad2d(x2d, rows_p, d_in_p)
    vtm_p = _pad2d(vtm, d_in_p, n_p)
    ut_p = _pad2d(ut, n_p, d_out_p)

    # Cost-based path choice: the fused low-rank chain wins whenever
    # n << min(d_in, d_out); only materialize W when it is actually cheaper
    # (n ~ d) or the caller wants the dense weight for reuse across calls.
    if materialize_weight is None:
        lowrank_cost = rows_p * n_p * (d_in_p + d_out_p)
        mat_cost = d_in_p * d_out_p * (n_p + rows_p)
        materialize_weight = mat_cost < lowrank_cost

    if materialize_weight:
        # W = Vtm @ U^T  (d_in_p, d_out_p), then y = x @ W.
        w = tiled_matmul(vtm_p, ut_p, tm=t_in, tn=t_out, tk=n_p,
                         out_dtype=compute_dtype)
        y2d = tiled_matmul(x_p, w, tm=t_row, tn=t_out, tk=t_in,
                           out_dtype=out_dtype)
    else:
        # Low-rank chain: t = x @ Vtm (rows_p, n_p), then y = t @ U^T.
        # The tiny (rows_p, n_p) intermediate round-trip is negligible vs. x / y
        # traffic, and both matmuls are fully tiled / parallel over their output.
        t = tiled_matmul(x_p, vtm_p, tm=t_row, tn=n_p, tk=t_in,
                         out_dtype=compute_dtype)
        y2d = tiled_matmul(t, ut_p, tm=t_row, tn=t_out, tk=n_p,
                           out_dtype=out_dtype)

    y2d = y2d[:rows, :d_out]
    return y2d.reshape(*lead, d_out)


# ---------------------------------------------------------------------------
# Deterministic parameter construction (mirrors SVFTLayer.__init__, banded pattern)
# ---------------------------------------------------------------------------
def make_svft_params(key, d_out, d_in, n, off_diag):
    k_u, k_v, k_s, k_sp = jax.random.split(key, 4)

    # Orthonormal "pre-trained" singular vectors: u (d_out, n), v (n, d_in)
    u, _ = jnp.linalg.qr(jax.random.normal(k_u, (d_out, n), jnp.float32))
    qv, _ = jnp.linalg.qr(jax.random.normal(k_v, (d_in, n), jnp.float32))
    v = qv.T                                                    # (n, d_in)

    # Frozen singular values (positive, descending)
    s_pre = jnp.sort(jnp.abs(jax.random.normal(k_sp, (n,), jnp.float32)))[::-1] + 0.1

    # Banded sparsity pattern: |i - j| <= off_diag
    ii, jj = np.nonzero(
        np.abs(np.arange(n)[:, None] - np.arange(n)[None, :]) <= off_diag)
    s_row = jnp.asarray(ii, jnp.int32)
    s_col = jnp.asarray(jj, jnp.int32)
    k = s_row.shape[0]                                          # = n*(2d+1) - d*(d+1)

    # trainable s: kaiming_normal_ on shape (1, k) -> std = sqrt(2 / k)
    s_vals = jax.random.normal(k_s, (k,), jnp.float32) * math.sqrt(2.0 / k)
    gate = jnp.float32(0.0)                                     # sigmoid(0) = 0.5
    return u, v, s_pre, s_vals, s_row, s_col, gate


if __name__ == "__main__":
    # Small shapes: batch=2, seq=8, d_in=32, d_out=32, rank n=16, off_diag=1 (banded)
    batch, seq, d_in, d_out, n, off_diag = 2, 8, 32, 32, 16, 1

    key = jax.random.PRNGKey(0)
    k_x, k_p = jax.random.split(key)
    u, v, s_pre, s_vals, s_row, s_col, gate = make_svft_params(
        k_p, d_out, d_in, n, off_diag)
    x = jax.random.normal(k_x, (batch, seq, d_in), jnp.float32)

    # Pure-JAX f32 reference of the exact PyTorch semantics
    m_ref = jnp.zeros((n, n), jnp.float32).at[s_row, s_col].add(
        s_vals * jax.nn.sigmoid(gate)) + jnp.diag(s_pre)
    weight_ref = (m_ref @ v).T @ u.T                            # (d_in, d_out)
    y_ref = x @ weight_ref

    # Path 1: fused low-rank chain (the cost model picks this automatically)
    y_lr = jax.block_until_ready(
        svft_forward(x, u, v, s_pre, s_vals, s_row, s_col, gate,
                     materialize_weight=False))
    # Path 2: materialized-weight path (W = Vtm @ U^T, then x @ W)
    y_w = jax.block_until_ready(
        svft_forward(x, u, v, s_pre, s_vals, s_row, s_col, gate,
                     materialize_weight=True))
    # Path 3: full-precision escape hatch (compute_dtype=f32)
    y_f32 = jax.block_until_ready(
        svft_forward(x, u, v, s_pre, s_vals, s_row, s_col, gate,
                     compute_dtype=jnp.float32))

    assert y_lr.shape == (batch, seq, d_out)
    assert y_w.shape == (batch, seq, d_out)
    assert y_f32.shape == (batch, seq, d_out)
    # bf16 operands with f32 accumulation -> loosened tolerance vs f32 reference
    assert jnp.allclose(y_lr, y_ref, atol=3e-2, rtol=3e-2), "low-rank path mismatch"
    assert jnp.allclose(y_w, y_ref, atol=3e-2, rtol=3e-2), "materialized-weight path mismatch"
    # f32 compute path should match tightly
    assert jnp.allclose(y_f32, y_ref, atol=1e-4, rtol=1e-4), "f32 path mismatch"
    print("KERNEL_OK")
</pallas_src>

<mosaic_0001>
module attributes {stable_mosaic.version = 11 : i64} {
  func.func @_matmul_kernel(%arg0: i32, %arg1: i32, %arg2: i32, %arg3: memref<16x128xbf16, #tpu.memory_space<vmem>>, %arg4: memref<128x128xbf16, #tpu.memory_space<vmem>>, %arg5: memref<16x128xbf16, #tpu.memory_space<vmem>>, %arg6: memref<16x128xf32, #tpu.memory_space<vmem>>) attributes {dimension_semantics = [#tpu.dimension_semantics<parallel>, #tpu.dimension_semantics<parallel>, #tpu.dimension_semantics<arbitrary>], iteration_bounds = array<i64: 1, 1, 1>, scalar_prefetch = 0 : i64, scratch_operands = 1 : i64, tpu.core_type = #tpu.core_type<tc>, window_params = [{transform_indices = @transform_0, window_bounds = array<i64: 16, 128>}, {transform_indices = @transform_1, window_bounds = array<i64: 128, 128>}, {transform_indices = @transform_2, window_bounds = array<i64: 16, 128>}]} {
    %c0_i32 = arith.constant 0 : i32
    %0 = arith.cmpi eq, %arg2, %c0_i32 : i32
    %1 = arith.extui %0 : i1 to i32
    %c0_i32_0 = arith.constant 0 : i32
    %2 = arith.cmpi ne, %1, %c0_i32_0 : i32
    scf.if %2 {
      %cst_10 = arith.constant 0.000000e+00 : f32
      %12 = vector.broadcast %cst_10 : f32 to vector<16x128xf32>
      %c0_11 = arith.constant 0 : index
      %c0_12 = arith.constant 0 : index
      %13 = vector.load %arg6[%c0_11, %c0_12] : memref<16x128xf32, #tpu.memory_space<vmem>>, vector<16x128xf32>
      tpu.vector_store %arg6[%c0_11, %c0_12], %12 {strides = array<i32>} : memref<16x128xf32, #tpu.memory_space<vmem>>, vector<16x128xf32>,
    } else {
    }
    %c0 = arith.constant 0 : index
    %c0_1 = arith.constant 0 : index
    %3 = vector.load %arg6[%c0, %c0_1] : memref<16x128xf32, #tpu.memory_space<vmem>>, vector<16x128xf32>
    %c0_2 = arith.constant 0 : index
    %c0_3 = arith.constant 0 : index
    %4 = vector.load %arg3[%c0_2, %c0_3] : memref<16x128xbf16, #tpu.memory_space<vmem>>, vector<16x128xbf16>
    %c0_4 = arith.constant 0 : index
    %c0_5 = arith.constant 0 : index
    %5 = vector.load %arg4[%c0_4, %c0_5] : memref<128x128xbf16, #tpu.memory_space<vmem>>, vector<128x128xbf16>
    %cst = arith.constant dense<0.000000e+00> : vector<16x128xf32>
    %6 = tpu.matmul %4, %5, %cst {dimension_numbers = #tpu.dot_dimension_numbers<[1], [0], [0], [1], [0, 0, 1, 1], [], []>} : vector<16x128xbf16>, vector<128x128xbf16>, vector<16x128xf32> -> vector<16x128xf32>
    %7 = arith.addf %3, %6 : vector<16x128xf32>
    %c0_6 = arith.constant 0 : index
    %c0_7 = arith.constant 0 : index
    %8 = vector.load %arg6[%c0_6, %c0_7] : memref<16x128xf32, #tpu.memory_space<vmem>>, vector<16x128xf32>
    tpu.vector_store %arg6[%c0_6, %c0_7], %7 {strides = array<i32>} : memref<16x128xf32, #tpu.memory_space<vmem>>, vector<16x128xf32>,
    %c0_i32_8 = arith.constant 0 : i32
    %9 = arith.cmpi eq, %arg2, %c0_i32_8 : i32
    %10 = arith.extui %9 : i1 to i32
    %c0_i32_9 = arith.constant 0 : i32
    %11 = arith.cmpi ne, %10, %c0_i32_9 : i32
    scf.if %11 {
      %c0_10 = arith.constant 0 : index
      %c0_11 = arith.constant 0 : index
      %12 = vector.load %arg6[%c0_10, %c0_11] : memref<16x128xf32, #tpu.memory_space<vmem>>, vector<16x128xf32>
      %13 = arith.truncf %12 : vector<16x128xf32> to vector<16x128xbf16>
      %c0_12 = arith.constant 0 : index
      %c0_13 = arith.constant 0 : index
      %14 = vector.load %arg5[%c0_12, %c0_13] : memref<16x128xbf16, #tpu.memory_space<vmem>>, vector<16x128xbf16>
      tpu.vector_store %arg5[%c0_12, %c0_13], %13 {strides = array<i32>} : memref<16x128xbf16, #tpu.memory_space<vmem>>, vector<16x128xbf16>,
    } else {
    }
    return
  }
  func.func @transform_0(%arg0: i32, %arg1: i32, %arg2: i32) -> (i32, i32) {
    %c0_i32 = arith.constant 0 : i32
    return %arg0, %arg2 : i32, i32
  }
  func.func @transform_1(%arg0: i32, %arg1: i32, %arg2: i32) -> (i32, i32) {
    %c0_i32 = arith.constant 0 : i32
    return %arg2, %arg1 : i32, i32
  }
  func.func @transform_2(%arg0: i32, %arg1: i32, %arg2: i32) -> (i32, i32) {
    %c0_i32 = arith.constant 0 : i32
    return %arg0, %arg1 : i32, i32
  }
}

</mosaic_0001>

<bundles_post_ra>
// kernel: tpu_custom_call.1
= control target key start
LH: loop header
LB: loop body
LE: loop exit
PB: predicated region body
PF: predicated region fallthrough
CT: control target
= control target key end

     0   :  { %7 = vsyncpa [#allocation4], 0  ;;  %s401_s0 = inlined_call_operand.hbm [shape: bf16[16,128], index: 0, kind: input, shape index: {}]   ;;  %s402_s1 = inlined_call_operand.hbm [shape: bf16[128,128], index: 1, kind: input, shape index: {}]   ;;  %s403_s2 = inlined_call_operand.hbm [shape: bf16[16,128], index: 2, kind: output, shape index: {}]  }
   0x1   :  { %8 = vsyncpa [#allocation7], 0 }
   0x2   :  { %9 = vsyncpa [#allocation5], 0  ;;  %s334_s9 = smov [#allocation3]   ;;  %s262_s13 = scalar_lea.hbm %s401_s0, 128 }
   0x3   :  { %s15_s10 = sshll.u32 %s334_s9, 4  ;;  %p263_p0 = scmp.ne.s32.totalorder %s401_s0, %s262_s13  ;;  %s16_s10 = int_to_ptr.vmem [resolvable:$true] %s15_s10 }
   0x4   :  { %p266_p1 = scmp.lt.u32.totalorder %s262_s13, %s401_s0 }
   0x6   :  { %p268_p2 = pnand %p266_p1, %p263_p0 }
   0x8   :  { %271 = shalt.err (!%p268_p2)
}
   0x9   :  { %s272_s18 = scalar_lea.vmem %s16_s10, 128  ;;  %p277_p4 = scmp.lt.s32.totalorder %s16_s10, %s16_s10 }
   0xa   :  { %p273_p3 = scmp.ne.s32.totalorder %s16_s10, %s272_s18  ;;  %p278_p5 = scmp.lt.s32.totalorder %s272_s18, %s272_s18 }
   0xc   :  { %p279_p6 = por %p278_p5, %p277_p4 }
   0xe   :  { %p280_p7 = pnand %p279_p6, %p273_p3 }
  0x10   :  { %283 = shalt.err (!%p280_p7)
}
  0x11   :  { %s335_s19 = smov 64   ;;  %s336_s20 = smov 4  }
  0x12   :  { %21 = dma.hbm_to_vmem [thread:$0]  %s401_s0, 128, %s16_s10, [#allocation4], %s335_s19, %s335_s19, %s336_s20  }
  0x13   :  { %s337_s23 = smov [#allocation6]   ;;  %s284_s27 = scalar_lea.hbm %s402_s1, 1024 }
  0x14   :  { %s27_s24 = sshll.u32 %s337_s23, 4  ;;  %p285_p8 = scmp.ne.s32.totalorder %s402_s1, %s284_s27  ;;  %s28_s24 = int_to_ptr.vmem [resolvable:$true] %s27_s24 }
  0x15   :  { %p288_p9 = scmp.lt.u32.totalorder %s284_s27, %s402_s1 }
  0x17   :  { %p290_p10 = pnand %p288_p9, %p285_p8 }
  0x19   :  { %293 = shalt.err (!%p290_p10)
}
  0x1a   :  { %s294_s4 = scalar_lea.vmem %s28_s24, 1024  ;;  %p299_p12 = scmp.lt.s32.totalorder %s28_s24, %s28_s24 }
  0x1b   :  { %p295_p11 = scmp.ne.s32.totalorder %s28_s24, %s294_s4  ;;  %p300_p13 = scmp.lt.s32.totalorder %s294_s4, %s294_s4 }
  0x1d   :  { %p301_p0 = por %p300_p13, %p299_p12 }
  0x1f   :  { %p302_p1 = pnand %p301_p0, %p295_p11 }
  0x21   :  { %305 = shalt.err (!%p302_p1)
}
  0x22   :  { %33 = dma.hbm_to_vmem [thread:$0]  %s402_s1, 1024, %s28_s24, [#allocation7], %s335_s19, %s335_s19, %s336_s20  }
  0x23   :  { %328 = dma.done.wait [#allocation4], 128  }
  0x24   :  { %329 = vsyncadd [#allocation4], 4294967168 }
  0x25   :  { %330 = dma.done.wait [#allocation7], 1024  }
  0x26   :  { %331 = vsyncadd [#allocation7], 4294966272  ;;  %v338_v0 = vmov 0.0   ;;  %vm339_vm0 = vmmov 0   ;;  %v253_v1 = vld [vmem:[#allocation6] sm:$0xff]   ;;  %v254_v2 = vld [vmem:[#allocation6 + $0x8] sm:$0xff]  }
  0x27   :  { %226 = vmatprep.subr.bf16.mxu0 %v338_v0  ;;  %242 = vmatprep.mubr.msk.bf16.mxu0 %vm339_vm0, %v338_v0  ;;  %v255_v3 = vld [vmem:[#allocation6 + $0x10] sm:$0xff]   ;;  %v256_v4 = vld [vmem:[#allocation6 + $0x18] sm:$0xff]   ;;  %v257_v5 = vld [vmem:[#allocation6 + $0x20] sm:$0xff]   ;;  %s340_s1 = smov [#allocation8]  }
  0x28   :  { %227 = vmatpush3.bf16.msra.mxu0 %v253_v1  ;;  %v258_v6 = vld [vmem:[#allocation6 + $0x28] sm:$0xff]   ;;  %v259_v7 = vld [vmem:[#allocation6 + $0x30] sm:$0xff]   ;;  %v260_v8 = vld [vmem:[#allocation6 + $0x38] sm:$0xff]   ;;  %s186_s6 = sshll.u32 %s340_s1, 4  ;;  %s187_s6 = int_to_ptr.vmem [resolvable:$true] %s186_s6 }
  0x29   :  { %228 = vmatprep.subr.bf16.mxu0 %v338_v0  ;;  %v261_v9 = vld [vmem:[#allocation3] sm:$0xff]   ;;  %s306_s7 = scalar_lea.vmem %s187_s6, 128  ;;  %p311_p3 = scmp.lt.s32.totalorder %s187_s6, %s187_s6 }
  0x2a   :  { %p307_p2 = scmp.ne.s32.totalorder %s187_s6, %s306_s7  ;;  %p312_p4 = scmp.lt.s32.totalorder %s306_s7, %s306_s7 }
  0x2c   :  { %229 = vmatpush3.bf16.msra.mxu0 %v254_v2  ;;  %p313_p5 = por %p312_p4, %p311_p3 }
  0x2d   :  { %230 = vmatprep.subr.bf16.mxu0 %v338_v0 }
  0x2e   :  { %p314_p6 = pnand %p313_p5, %p307_p2 }
  0x30   :  { %231 = vmatpush3.bf16.msra.mxu0 %v255_v3 }
  0x31   :  { %232 = vmatprep.subr.bf16.mxu0 %v338_v0 }
  0x34   :  { %233 = vmatpush3.bf16.msra.mxu0 %v256_v4 }
  0x35   :  { %234 = vmatprep.subr.bf16.mxu0 %v338_v0 }
  0x38   :  { %235 = vmatpush3.bf16.msra.mxu0 %v257_v5 }
  0x39   :  { %236 = vmatprep.subr.bf16.mxu0 %v338_v0 }
  0x3c   :  { %237 = vmatpush3.bf16.msra.mxu0 %v258_v6 }
  0x3d   :  { %238 = vmatprep.subr.bf16.mxu0 %v338_v0 }
  0x40   :  { %239 = vmatpush3.bf16.msra.mxu0 %v259_v7 }
  0x41   :  { %240 = vmatprep.subr.bf16.mxu0 %v338_v0 }
  0x44   :  { %241 = vmatpush3.bf16.msra.mxu0 %v260_v8 }
  0x47   :  { %243 = vmatmul.mubr.bf16.vlgmr.msra.gmra.mrb[0].mxu0 %v261_v9 }
 0x11a   :  { %v155_v10 = vpop.f32.mrb[0].mxu0 }
 0x11b   :  { %v244_v11 = vpop.f32.mrb[1].mxu0 }
 0x11c   :  { %v158_v12 = vpop.f32.mrb[2].mxu0 }
 0x11d   :  { %v215_v13 = vpack.c.bf16 %v158_v12, %v155_v10  ;;  %v245_v14 = vpop.f32.mrb[3].mxu0 }
 0x11f   :  { %216 = vst [vmem:[#allocation8] sm:$0xff] %v215_v13  }
 0x120   :  { %317 = shalt.err (!%p314_p6)
}
 0x121   :  { %s318_s10 = scalar_lea.hbm %s403_s2, 128 }
 0x122   :  { %p319_p7 = scmp.ne.s32.totalorder %s403_s2, %s318_s10  ;;  %p322_p8 = scmp.lt.u32.totalorder %s318_s10, %s403_s2 }
 0x124   :  { %p324_p9 = pnand %p322_p8, %p319_p7 }
 0x126   :  { %327 = shalt.err (!%p324_p9)
}
 0x127   :  { %192 = dma.vmem_to_hbm [thread:$0]  %s187_s6, 128, %s403_s2, [#allocation5], %s335_s19, %s335_s19, %s336_s20  }
 0x128   :  { %332 = dma.done.wait [#allocation5], 128  }
 0x129   :  { %333 = vsyncadd [#allocation5], 4294967168 }
 0x12a   :  { %196 = vsyncpa [#allocation4], 1 }
 0x12b   :  { %197 = vsyncpa [#allocation7], 1 }
 0x12c   :  { %198 = vsyncpa [#allocation5], 1 }

</bundles_post_ra>
